<compile_context>
chip_gen: v5e
topology: v5e:2x2
jax: 0.10.0
libtpu: 0.0.40
codegen_flags: <defaults>
</compile_context>

<pallas_src>
import functools

import jax
import jax.numpy as jnp
import numpy as np
from jax.experimental import pallas as pl
from jax.experimental.pallas import tpu as pltpu

EPS = 1e-5                       # nn.LayerNorm default eps
K = 9                            # conv kernel size
BASE_DILS = (1, 1, 4, 16, 64)    # per-stack dilations (padding = 4*dil, "same")


# --------------------------------------------------------------------------
# Kernel 1: Gaussian Fourier time embedding + Linear + ReLU, then ALL per-layer
#           time projections in one fat matmul:  (B,) -> (B, n_layers*H)
# --------------------------------------------------------------------------
def _time_proj_kernel(t_ref, wproj_ref, wsin_ref, wcos_ref, b_ref,
                      twf_ref, tbf_ref, o_ref):
    # t: (B,1)  wproj: (1,H/2)  wsin/wcos: (H/2,H)  b: (1,H)
    # twf: (H, nL*H)  tbf: (1, nL*H)  ->  o: (B, nL*H)
    xp = t_ref[...] * wproj_ref[...] * (2.0 * np.pi)                  # (B, H/2)
    temb = (jnp.dot(jnp.sin(xp), wsin_ref[...], preferred_element_type=jnp.float32)
            + jnp.dot(jnp.cos(xp), wcos_ref[...], preferred_element_type=jnp.float32)
            + b_ref[...])
    temb = jnp.maximum(temb, 0.0)                                     # (B, H)
    o_ref[...] = (jnp.dot(temb, twf_ref[...], preferred_element_type=jnp.float32)
                  + tbf_ref[...])                                     # (B, nL*H)


def time_projections(t, gfp_w, te_w, te_b, tw_all, tb_all):
    B = t.shape[0]
    H = te_w.shape[0]
    nL = tw_all.shape[0]
    half = H // 2
    # stack per-layer Dense weights as (H_in, nL*H_out)
    tw_flat = jnp.transpose(tw_all, (1, 0, 2)).reshape(H, nL * H)
    tproj = pl.pallas_call(
        _time_proj_kernel,
        out_shape=jax.ShapeDtypeStruct((B, nL * H), jnp.float32),
    )(t.reshape(B, 1).astype(jnp.float32),
      gfp_w.reshape(1, half),
      te_w[:half, :],                 # sin half of Linear(H, H)
      te_w[half:, :],                 # cos half
      te_b.reshape(1, H),
      tw_flat, tb_all.reshape(1, nL * H))
    return tproj.reshape(B, nL, H)


# --------------------------------------------------------------------------
# Kernel 2: fused whole-network kernel (grid over batch only)
#   first conv -> [time-add, LayerNorm, dilated conv(im2col), ReLU, residual]*
#   -> 1x1 head.  All padding / im2col staging lives in VMEM scratch.
# --------------------------------------------------------------------------
def _fused_net_kernel(x_ref, tproj_ref, lw_ref, lb_ref, cw_ref, cb_ref,
                      g_ref, bt_ref, f1w_ref, f1b_ref, f2w_ref, f2b_ref,
                      o_ref, pad0_ref, col0_ref, pad_ref, col_ref,
                      *, L, H, V, dils, maxpad):
    # Zero the padded scratch buffers once per batch element: their margins
    # supply the Conv1d zero padding for every layer (interior is overwritten).
    pad0_ref[...] = jnp.zeros_like(pad0_ref)
    pad_ref[...] = jnp.zeros_like(pad_ref)

    # ---- first conv: one-hot(tokens) -> im2col -> (L, K*V) @ (K*V, H) -> ReLU
    tok = x_ref[0]                                                    # (L, 1) int32
    onehot = jnp.where(
        tok == jax.lax.broadcasted_iota(jnp.int32, (L, V), 1), 1.0, 0.0)
    pad0_ref[K // 2:K // 2 + L, :] = onehot
    for k in range(K):
        col0_ref[:, k * V:(k + 1) * V] = pad0_ref[k:k + L, :]
    feat = jnp.maximum(
        jnp.dot(col0_ref[...], lw_ref[...],
                preferred_element_type=jnp.float32) + lb_ref[...], 0.0)   # (L, H)

    tproj = tproj_ref[0]                                              # (nL, H)
    gamma = g_ref[...]
    beta = bt_ref[...]
    cbias = cb_ref[...]

    # ---- dilated residual conv stack (statically unrolled, weights resident)
    for i, dil in enumerate(dils):
        # TODO(synk): nn.Dropout omitted — identity in eval/deterministic mode.
        h = feat + tproj[i:i + 1, :]                                  # + Dense(t_emb)
        mean = jnp.mean(h, axis=-1, keepdims=True)                    # LayerNorm(H)
        var = jnp.mean((h - mean) ** 2, axis=-1, keepdims=True)
        h = (h - mean) * jax.lax.rsqrt(var + EPS)
        h = h * gamma[i:i + 1, :] + beta[i:i + 1, :]

        pad_ref[maxpad:maxpad + L, :] = h                             # in-kernel pad
        for k in range(K):                                            # im2col taps
            off = maxpad + (k - K // 2) * dil
            col_ref[:, k * H:(k + 1) * H] = pad_ref[off:off + L, :]
        conv = (jnp.dot(col_ref[...], cw_ref[i],
                        preferred_element_type=jnp.float32)
                + cbias[i:i + 1, :])                                  # (L, H)
        feat = jnp.maximum(conv, 0.0) + feat                          # ReLU + residual

    # ---- final head: Conv1d(H,H,1) -> ReLU -> Conv1d(H,V,1)  (1x1 == matmul)
    hf = jnp.maximum(
        jnp.dot(feat, f1w_ref[...], preferred_element_type=jnp.float32)
        + f1b_ref[...], 0.0)
    o_ref[0] = (jnp.dot(hf, f2w_ref[...], preferred_element_type=jnp.float32)
                + f2b_ref[...])


def fused_net(x_tok, tproj, lin_w, lin_b, conv_w, conv_b, gamma, beta,
              f1_w, f1_b, f2_w, f2_b, *, dils):
    B, L = x_tok.shape
    nL, _, H, _ = conv_w.shape                       # (nL, K, H, H)
    V = lin_w.shape[1]                               # (K, V, H)
    maxpad = (K // 2) * max(dils)
    kernel = functools.partial(_fused_net_kernel, L=L, H=H, V=V,
                               dils=tuple(dils), maxpad=maxpad)
    return pl.pallas_call(
        kernel,
        grid=(B,),
        in_specs=[
            pl.BlockSpec((1, L, 1), lambda b: (b, 0, 0)),        # tokens
            pl.BlockSpec((1, nL, H), lambda b: (b, 0, 0)),       # time projections
            pl.BlockSpec((K * V, H), lambda b: (0, 0)),          # first conv W (im2col)
            pl.BlockSpec((1, H), lambda b: (0, 0)),              # first conv b
            pl.BlockSpec((nL, K * H, H), lambda b: (0, 0, 0)),   # layer conv W (im2col)
            pl.BlockSpec((nL, H), lambda b: (0, 0)),             # layer conv b
            pl.BlockSpec((nL, H), lambda b: (0, 0)),             # LN gamma
            pl.BlockSpec((nL, H), lambda b: (0, 0)),             # LN beta
            pl.BlockSpec((H, H), lambda b: (0, 0)),              # head W1
            pl.BlockSpec((1, H), lambda b: (0, 0)),              # head b1
            pl.BlockSpec((H, V), lambda b: (0, 0)),              # head W2
            pl.BlockSpec((1, V), lambda b: (0, 0)),              # head b2
        ],
        out_specs=pl.BlockSpec((1, L, V), lambda b: (b, 0, 0)),
        out_shape=jax.ShapeDtypeStruct((B, L, V), jnp.float32),
        scratch_shapes=[
            pltpu.VMEM((L + K - 1, V), jnp.float32),             # padded one-hot
            pltpu.VMEM((L, K * V), jnp.float32),                 # im2col (first conv)
            pltpu.VMEM((L + 2 * maxpad, H), jnp.float32),        # padded activation
            pltpu.VMEM((L, K * H), jnp.float32),                 # im2col (layers)
        ],
        compiler_params=pltpu.CompilerParams(
            dimension_semantics=("parallel",),                   # batch -> megacore
            vmem_limit_bytes=32 * 1024 * 1024),
    )(x_tok.reshape(B, L, 1).astype(jnp.int32), tproj,
      lin_w.reshape(K * V, H), lin_b.reshape(1, H),
      conv_w.reshape(nL, K * H, H), conv_b, gamma, beta,
      f1_w, f1_b.reshape(1, H), f2_w, f2_b.reshape(1, V))


# --------------------------------------------------------------------------
# Parameter init (deterministic, synthetic) and full forward
# --------------------------------------------------------------------------
def init_params(key, vocab_size, hidden_dim, num_cnn_stacks):
    H, V = hidden_dim, vocab_size
    dils = tuple(d for d in BASE_DILS for _ in range(num_cnn_stacks))
    nL = len(dils)
    state = {"k": key}

    def nrm(shape, scale=0.1):
        state["k"], sub = jax.random.split(state["k"])   # no fixed key budget
        return scale * jax.random.normal(sub, shape, jnp.float32)

    return {
        "vocab_size": V, "hidden_dim": H, "dils": dils,
        "gfp_w": nrm((H // 2,), 30.0),                    # GaussianFourierProjection.W
        "te_w": nrm((H, H)), "te_b": nrm((H,)),           # time_embedder Linear (in,out)
        "lin_w": nrm((K, V, H)), "lin_b": nrm((H,)),      # first Conv1d (K, Cin, Cout)
        "conv_w": nrm((nL, K, H, H)), "conv_b": nrm((nL, H)),
        "tw": nrm((nL, H, H)), "tb": nrm((nL, H)),        # per-layer Dense (in,out)
        "gamma": jnp.ones((nL, H), jnp.float32),
        "beta": jnp.zeros((nL, H), jnp.float32),
        "f1_w": nrm((H, H)), "f1_b": nrm((H,)),           # final 1x1 convs (in,out)
        "f2_w": nrm((H, V)), "f2_b": nrm((V,)),
    }


def cnn_forward(params, x, t):
    tproj = time_projections(t, params["gfp_w"], params["te_w"], params["te_b"],
                             params["tw"], params["tb"])
    return fused_net(x, tproj,
                     params["lin_w"], params["lin_b"],
                     params["conv_w"], params["conv_b"],
                     params["gamma"], params["beta"],
                     params["f1_w"], params["f1_b"],
                     params["f2_w"], params["f2_b"],
                     dils=params["dils"])                 # (B, D, V)


# --------------------------------------------------------------------------
# Pure-JAX reference (mirrors the PyTorch NCW formulation) for validation
# --------------------------------------------------------------------------
def _ref_conv1d(x_ncl, w_oik, b, dil, pad):
    out = jax.lax.conv_general_dilated(
        x_ncl, w_oik, window_strides=(1,), padding=[(pad, pad)],
        rhs_dilation=(dil,), dimension_numbers=("NCH", "OIH", "NCH"))
    return out + b[None, :, None]


def reference_forward(params, x, t):
    V = params["vocab_size"]
    seq = jax.nn.one_hot(x, V, dtype=jnp.float32)                     # (B, L, V)
    xp = t[:, None] * params["gfp_w"][None, :] * 2.0 * np.pi
    emb = jnp.concatenate([jnp.sin(xp), jnp.cos(xp)], axis=-1)
    temb = jax.nn.relu(emb @ params["te_w"] + params["te_b"])
    feat = seq.transpose(0, 2, 1)                                     # (B, V, L)
    feat = jax.nn.relu(
        _ref_conv1d(feat, jnp.transpose(params["lin_w"], (2, 1, 0)),
                    params["lin_b"], 1, K // 2))
    for i, dil in enumerate(params["dils"]):
        h = feat + (temb @ params["tw"][i] + params["tb"][i])[:, :, None]
        h = h.transpose(0, 2, 1)
        mean = h.mean(-1, keepdims=True)
        var = ((h - mean) ** 2).mean(-1, keepdims=True)
        h = (h - mean) / jnp.sqrt(var + EPS) * params["gamma"][i] + params["beta"][i]
        h = jax.nn.relu(
            _ref_conv1d(h.transpose(0, 2, 1),
                        jnp.transpose(params["conv_w"][i], (2, 1, 0)),
                        params["conv_b"][i], dil, (K // 2) * dil))
        feat = h + feat
    h = jax.nn.relu(
        _ref_conv1d(feat, params["f1_w"].T[:, :, None], params["f1_b"], 1, 0))
    out = _ref_conv1d(h, params["f2_w"].T[:, :, None], params["f2_b"], 1, 0)
    return out.transpose(0, 2, 1)                                     # (B, L, V)


if __name__ == "__main__":
    VOCAB, HIDDEN, STACKS = 4, 32, 1
    B, L = 2, 16

    key = jax.random.PRNGKey(0)
    kp, kx, kt = jax.random.split(key, 3)
    params = init_params(kp, VOCAB, HIDDEN, STACKS)
    x = jax.random.randint(kx, (B, L), 0, VOCAB, dtype=jnp.int32)
    t = jax.random.uniform(kt, (B,), dtype=jnp.float32)

    out = cnn_forward(params, x, t)
    out = jax.block_until_ready(out)
    assert out.shape == (B, L, VOCAB), out.shape

    ref = reference_forward(params, x, t)
    np.testing.assert_allclose(np.asarray(out), np.asarray(ref),
                               atol=2e-3, rtol=2e-3)
    print("KERNEL_OK")
</pallas_src>

<mosaic_0001>
module attributes {stable_mosaic.version = 11 : i64} {
  func.func @_time_proj_kernel(%arg0: memref<2x1xf32, #tpu.memory_space<vmem>>, %arg1: memref<1x16xf32, #tpu.memory_space<vmem>>, %arg2: memref<16x32xf32, #tpu.memory_space<vmem>>, %arg3: memref<16x32xf32, #tpu.memory_space<vmem>>, %arg4: memref<1x32xf32, #tpu.memory_space<vmem>>, %arg5: memref<32x160xf32, #tpu.memory_space<vmem>>, %arg6: memref<1x160xf32, #tpu.memory_space<vmem>>, %arg7: memref<2x160xf32, #tpu.memory_space<vmem>>) attributes {dimension_semantics = [], scalar_prefetch = 0 : i64, scratch_operands = 0 : i64, tpu.core_type = #tpu.core_type<tc>} {
    %c0 = arith.constant 0 : index
    %c0_0 = arith.constant 0 : index
    %0 = vector.load %arg0[%c0, %c0_0] : memref<2x1xf32, #tpu.memory_space<vmem>>, vector<2x1xf32>
    %c0_1 = arith.constant 0 : index
    %c0_2 = arith.constant 0 : index
    %1 = vector.load %arg1[%c0_1, %c0_2] : memref<1x16xf32, #tpu.memory_space<vmem>>, vector<1x16xf32>
    %2 = vector.broadcast %0 : vector<2x1xf32> to vector<2x16xf32>
    %3 = vector.broadcast %1 : vector<1x16xf32> to vector<2x16xf32>
    %4 = arith.mulf %2, %3 : vector<2x16xf32>
    %cst = arith.constant 6.28318548 : f32
    %5 = vector.broadcast %cst : f32 to vector<2x16xf32>
    %6 = arith.mulf %4, %5 : vector<2x16xf32>
    %7 = math.sin %6 : vector<2x16xf32>
    %c0_3 = arith.constant 0 : index
    %c0_4 = arith.constant 0 : index
    %8 = vector.load %arg2[%c0_3, %c0_4] : memref<16x32xf32, #tpu.memory_space<vmem>>, vector<16x32xf32>
    %cst_5 = arith.constant dense<0.000000e+00> : vector<2x32xf32>
    %9 = tpu.matmul %7, %8, %cst_5 {dimension_numbers = #tpu.dot_dimension_numbers<[1], [0], [0], [1], [0, 0, 1, 1], [], []>} : vector<2x16xf32>, vector<16x32xf32>, vector<2x32xf32> -> vector<2x32xf32>
    %10 = math.cos %6 : vector<2x16xf32>
    %c0_6 = arith.constant 0 : index
    %c0_7 = arith.constant 0 : index
    %11 = vector.load %arg3[%c0_6, %c0_7] : memref<16x32xf32, #tpu.memory_space<vmem>>, vector<16x32xf32>
    %cst_8 = arith.constant dense<0.000000e+00> : vector<2x32xf32>
    %12 = tpu.matmul %10, %11, %cst_8 {dimension_numbers = #tpu.dot_dimension_numbers<[1], [0], [0], [1], [0, 0, 1, 1], [], []>} : vector<2x16xf32>, vector<16x32xf32>, vector<2x32xf32> -> vector<2x32xf32>
    %13 = arith.addf %9, %12 : vector<2x32xf32>
    %c0_9 = arith.constant 0 : index
    %c0_10 = arith.constant 0 : index
    %14 = vector.load %arg4[%c0_9, %c0_10] : memref<1x32xf32, #tpu.memory_space<vmem>>, vector<1x32xf32>
    %15 = vector.broadcast %14 : vector<1x32xf32> to vector<2x32xf32>
    %16 = arith.addf %13, %15 : vector<2x32xf32>
    %cst_11 = arith.constant 0.000000e+00 : f32
    %17 = vector.broadcast %cst_11 : f32 to vector<2x32xf32>
    %18 = arith.maximumf %16, %17 : vector<2x32xf32>
    %c0_12 = arith.constant 0 : index
    %c0_13 = arith.constant 0 : index
    %19 = vector.load %arg5[%c0_12, %c0_13] : memref<32x160xf32, #tpu.memory_space<vmem>>, vector<32x160xf32>
    %cst_14 = arith.constant dense<0.000000e+00> : vector<2x160xf32>
    %20 = tpu.matmul %18, %19, %cst_14 {dimension_numbers = #tpu.dot_dimension_numbers<[1], [0], [0], [1], [0, 0, 1, 1], [], []>} : vector<2x32xf32>, vector<32x160xf32>, vector<2x160xf32> -> vector<2x160xf32>
    %c0_15 = arith.constant 0 : index
    %c0_16 = arith.constant 0 : index
    %21 = vector.load %arg6[%c0_15, %c0_16] : memref<1x160xf32, #tpu.memory_space<vmem>>, vector<1x160xf32>
    %22 = vector.broadcast %21 : vector<1x160xf32> to vector<2x160xf32>
    %23 = arith.addf %20, %22 : vector<2x160xf32>
    %c0_17 = arith.constant 0 : index
    %c0_18 = arith.constant 0 : index
    %24 = vector.load %arg7[%c0_17, %c0_18] : memref<2x160xf32, #tpu.memory_space<vmem>>, vector<2x160xf32>
    tpu.vector_store %arg7[%c0_17, %c0_18], %23 {strides = array<i32>} : memref<2x160xf32, #tpu.memory_space<vmem>>, vector<2x160xf32>,
    return
  }
}

</mosaic_0001>

<bundles_post_ra>
// kernel: tpu_custom_call.1
= control target key start
LH: loop header
LB: loop body
LE: loop exit
PB: predicated region body
PF: predicated region fallthrough
CT: control target
= control target key end

     0   :  { %12 = vsyncpa [#allocation3], 0  ;;  %s805_s0 = inlined_call_operand.vmem [shape: f32[2,1], index: 0, kind: input, shape index: {}]   ;;  %s806_s1 = inlined_call_operand.vmem [shape: f32[1,16], index: 1, kind: input, shape index: {}]   ;;  %s807_s2 = inlined_call_operand.hbm [shape: f32[16,32], index: 2, kind: input, shape index: {}]   ;;  %s808_s3 = inlined_call_operand.hbm [shape: f32[16,32], index: 3, kind: input, shape index: {}]   ;;  %s809_s4 = inlined_call_operand.vmem [shape: f32[1,32], index: 4, kind: input, shape index: {}]   ;;  %s810_s5 = inlined_call_operand.hbm [shape: f32[32,160], index: 5, kind: input, shape index: {}]   ;;  %s811_s6 = inlined_call_operand.vmem [shape: f32[1,160], index: 6, kind: input, shape index: {}]   ;;  %s812_s7 = inlined_call_operand.hbm [shape: f32[2,160], index: 7, kind: output, shape index: {}]  }
   0x1   :  { %13 = vsyncpa [#allocation6], 0 }
   0x2   :  { %14 = vsyncpa [#allocation4], 0  ;;  %s36_s26 = sshll.u32 %s808_s3, 4  ;;  %s667_s27 = smov [#allocation5]   ;;  %s37_s26 = int_to_ptr.hbm [resolvable:$true] %s36_s26 }
   0x3   :  { %s38_s28 = sshll.u32 %s667_s27, 4  ;;  %s23_s8 = sshll.u32 %s807_s2, 4  ;;  %s39_s28 = int_to_ptr.vmem [resolvable:$true] %s38_s28  ;;  %s24_s8 = int_to_ptr.hbm [resolvable:$true] %s23_s8 }
   0x4   :  { %s668_s9 = smov 128   ;;  %s669_s10 = smov 8  }
   0x5   :  { %44 = dma.hbm_to_vmem [thread:$0]  %s37_s26, 256, %s39_s28, [#allocation6], %s668_s9, %s668_s9, %s669_s10  }
   0x6   :  { %s670_s11 = smov [#allocation2]   ;;  %s51_s15 = sshll.u32 %s810_s5, 4  ;;  %s52_s15 = int_to_ptr.hbm [resolvable:$true] %s51_s15 }
   0x7   :  { %s25_s12 = sshll.u32 %s670_s11, 4  ;;  %s671_s3 = smov [#allocation7]   ;;  %s26_s12 = int_to_ptr.vmem [resolvable:$true] %s25_s12 }
   0x8   :  { %31 = dma.hbm_to_vmem [thread:$0]  %s24_s8, 256, %s26_s12, [#allocation3], %s668_s9, %s668_s9, %s669_s10  }
   0x9   :  { %s53_s16 = sshll.u32 %s671_s3, 4  ;;  %s672_s17 = smov 256   ;;  %s54_s16 = int_to_ptr.vmem [resolvable:$true] %s53_s16 }
   0xa   :  { %s673_s18 = smov 16  }
   0xb   :  { %59 = dma.hbm_to_vmem [thread:$0]  %s52_s15, 1024, %s54_s16, [#allocation6], %s672_s17, %s672_s17, %s673_s18  }
   0xc   :  { %661 = dma.done.wait [#allocation3], 256  }
   0xd   :  { %662 = vsyncadd [#allocation3], 4294967040 }
   0xe   :  { %663 = dma.done.wait [#allocation6], 1280  }
   0xf   :  { %664 = vsyncadd [#allocation6], 4294966016  ;;  %v674_v0 = vmov 0   ;;  %v74_v1 = vld [vmem:[%s805_s0] sm:$0x3]  ;;  %v398_v2 = vld [vmem:[#allocation5 + $0x8] sm:$0xff] }
  0x10   :  { %562 = vset.pattern.permute.xlu0 %v674_v0  ;;  %v242_v3 = vld [vmem:[#allocation2 + $0x8] sm:$0xff]  ;;  %v397_v4 = vld [vmem:[#allocation5] sm:$0xff]  ;;  %417 = vmatpush.msra.mxu0 %v398_v2  ;;  %v241_v5 = vld [vmem:[#allocation2] sm:$0xff]  ;;  %v675_v21 = vmov 2102212464   ;;  %s526_s26 = sshll.u32 %s812_s7, 4  ;;  %s527_s26 = int_to_ptr.hbm [resolvable:$true] %s526_s26 }
  0x11   :  { %78 = vperm.xlu0 %562, %v74_v1   ;;  %440 = vmatpush.msra.mxu1 %v242_v3  ;;  %v563_v6 = vld [vmem:[%s806_s1] ss:$0 sm:$0xff]  ;;  %v676_v23 = vmov 920167782   ;;  %v677_v26 = vmov 1326507024  }
  0x12   :  { %418 = vmatpush.msra.mxu0 %v397_v4  ;;  %v678_v28 = vmov 683565275   ;;  %v679_v30 = vmov 2475754826   ;;  %v680_v33 = vmov 2131351028  }
  0x13   :  { %441 = vmatpush.msra.mxu1 %v241_v5 }
  0x83   :  { %v79_v7 = vpop.permute.xlu0 %78 }
  0x84   :  { %v84_v8 = vmul.f32 %v563_v6, %v79_v7 }
  0x86   :  { %v738_v9 = vmul.f32 6.2831855, %v84_v8 }
  0x88   :  { %v89_v10 = vand.u32 2139095040, %v738_v9  ;;  %v86_v13 = vand.u32 2147483647, %v738_v9  ;;  %vm88_vm12 = vcmp.lt.s32.totalorder %v738_v9, 0 }
  0x8a   :  { %v90_v11 = vshrl.u32 %v89_v10, 23  ;;  %v93_v15 = vand.u32 8388607, %v86_v13  ;;  %vm87_vm13 = vcmp.le.f32.partialorder %v86_v13, 0.7853982 }
  0x8c   :  { %v537_v12 = vadd.s32 4294967169, %v90_v11  ;;  %v94_v19 = vor.u32 8388608, %v93_v15 }
  0x8e   :  { %v96_v14 = vadd.s32 1, %v537_v12  ;;  %v753_v40 = vshll.u32 %v94_v19, 8 }
  0x90   :  { %vm97_vm0 = vcmp.gt.s32.totalorder %v96_v14, 0  ;;  %v135_v50 = vand.u32 65535, %v753_v40  ;;  %v136_v52 = vshrl.u32 %v753_v40, 16 }
  0x91   :  { %v98_v16 = vsel %vm97_vm0, %v96_v14, 0 }
  0x92   :  { %v100_v17 = vand.u32 31, %v98_v16  ;;  %v746_v20 = vshrl.u32 %v98_v16, 5 }
  0x94   :  { %v744_v18 = vsub.s32 32, %v100_v17  ;;  %v112_v22 = vshll.u32 %v675_v21, %v100_v17  ;;  %v115_v24 = vshll.u32 %v676_v23, %v100_v17  ;;  %v103_v29 = vshll.u32 %v678_v28, %v100_v17 }
  0x95   :  { %v106_v32 = vshll.u32 %v679_v30, %v100_v17  ;;  %v109_v35 = vshll.u32 %v680_v33, %v100_v17  ;;  %vm121_vm1 = vcmp.lt.s32.totalorder %v746_v20, 4  ;;  %vm118_vm2 = vcmp.lt.s32.totalorder %v746_v20, 1 }
  0x96   :  { %v113_v25 = vshrl.u32 %v676_v23, %v744_v18  ;;  %v116_v27 = vshrl.u32 %v677_v26, %v744_v18  ;;  %v104_v31 = vshrl.u32 %v679_v30, %v744_v18  ;;  %v107_v34 = vshrl.u32 %v680_v33, %v744_v18 }
  0x97   :  { %v110_v36 = vshrl.u32 %v675_v21, %v744_v18  ;;  %vm120_vm3 = vcmp.lt.s32.totalorder %v746_v20, 3  ;;  %vm119_vm4 = vcmp.lt.s32.totalorder %v746_v20, 2  ;;  %v102_v14 = vshrl.u32 %v678_v28, %v744_v18 }
  0x98   :  { %v114_v37 = vor.u32 %v113_v25, %v112_v22  ;;  %v117_v38 = vor.u32 %v116_v27, %v115_v24  ;;  %v105_v39 = vor.u32 %v104_v31, %v103_v29  ;;  %v108_v41 = vor.u32 %v107_v34, %v106_v32 }
  0x99   :  { %v111_v42 = vor.u32 %v110_v36, %v109_v35 }
  0x9a   :  { %v127_v43 = vsel %vm121_vm1, %v114_v37, 920167782  ;;  %v131_v44 = vsel %vm121_vm1, %v117_v38, 1326507024  ;;  %v126_v45 = vsel %vm118_vm2, %v105_v39, %v108_v41  ;;  %v122_v22 = vsel %vm118_vm2, %v102_v14, %v105_v39 }
  0x9b   :  { %v128_v46 = vsel %vm120_vm3, %v111_v42, %v127_v43  ;;  %v130_v47 = vsel %vm118_vm2, %v108_v41, %v111_v42  ;;  %v132_v49 = vsel %vm120_vm3, %v114_v37, %v131_v44  ;;  %v123_v10 = vsel %vm121_vm1, %v111_v42, 2102212464 }
  0x9c   :  { %v129_v48 = vsel %vm119_vm4, %v126_v45, %v128_v46  ;;  %v133_v51 = vsel %vm119_vm4, %v130_v47, %v132_v49  ;;  %v124_v23 = vsel %vm120_vm3, %v108_v41, %v123_v10  ;;  %vm399_vm1 = vcmask 130048  }
  0x9d   :  { %v159_v53 = vand.u32 65535, %v129_v48  ;;  %v160_v54 = vshrl.u32 %v129_v48, 16  ;;  %v137_v55 = vand.u32 65535, %v133_v51  ;;  %v138_v56 = vshrl.u32 %v133_v51, 16 }
  0x9e   :  { %v125_v28 = vsel %vm119_vm4, %v122_v22, %v124_v23 }
  0x9f   :  { %v162_v57 = vmul.u32 %v160_v54, %v135_v50  ;;  %v163_v58 = vmul.u32 %v159_v53, %v136_v52  ;;  %v140_v59 = vmul.u32 %v138_v56, %v135_v50  ;;  %v141_v60 = vmul.u32 %v137_v55, %v136_v52 }
  0xa0   :  { %v161_v61 = vmul.u32 %v159_v53, %v135_v50  ;;  %v139_v63 = vmul.u32 %v137_v55, %v135_v50  ;;  %v164_v2 = vmul.u32 %v160_v54, %v136_v52  ;;  %v142_v3 = vmul.u32 %v138_v56, %v136_v52 }
  0xa1   :  { %v165_v62 = vshll.u32 %v162_v57, 16  ;;  %v143_v1 = vshll.u32 %v140_v59, 16  ;;  %v167_v4 = vshll.u32 %v163_v58, 16  ;;  %v145_v6 = vshll.u32 %v141_v60, 16 }
  0xa2   :  { %v166_v19 = vshrl.u32 %v162_v57, 16  ;;  %v144_v24 = vshrl.u32 %v140_v59, 16  ;;  %v168_v26 = vshrl.u32 %v163_v58, 16  ;;  %v146_v29 = vshrl.u32 %v141_v60, 16 }
  0xa3   :  { %vm169_vm5 = vc.u32 %v161_v61, %v165_v62  ;;  %v171_v5 = vadd.s32 %v165_v62, %v161_v61  ;;  %vm147_vm6 = vc.u32 %v139_v63, %v143_v1  ;;  %v149_v7 = vadd.s32 %v143_v1, %v139_v63 }
  0xa4   :  { %v170_v8 = vsel %vm169_vm5, 1, %v674_v0  ;;  %v148_v11 = vsel %vm147_vm6, 1, %v674_v0  ;;  %v179_v33 = vmul.u32 %v753_v40, %v125_v28  ;;  %vm229_vm5 = vweird.f32 %v738_v9  ;;  %v459_v28 = vld [vmem:[#allocation7 + $0x38] sm:$0xff] }
  0xa5   :  { %v172_v12 = vadd.s32 %v170_v8, %v164_v2  ;;  %vm173_vm7 = vc.u32 %v171_v5, %v167_v4  ;;  %v150_v15 = vadd.s32 %v148_v11, %v142_v3  ;;  %vm151_vm8 = vc.u32 %v149_v7, %v145_v6  ;;  %502 = vmatpush.msra.mxu3 %v459_v28 }
  0xa6   :  { %v174_v16 = vsel %vm173_vm7, 1, %v674_v0  ;;  %v152_v17 = vsel %vm151_vm8, 1, %v674_v0  ;;  %v175_v0 = vadd.s32 %v171_v5, %v167_v4  ;;  %vm466_vm6 = vcmask 261120  }
  0xa7   :  { %v176_v21 = vadd.s32 %v174_v16, %v172_v12  ;;  %v154_v25 = vadd.s32 %v152_v17, %v150_v15  ;;  %vm513_vm7 = vcmask 1041408   ;;  %vm516_vm8 = vcmask 257026  }
  0xa9   :  { %v177_v27 = vadd.s32 %v176_v21, %v166_v19  ;;  %v155_v18 = vadd.s32 %v154_v25, %v144_v24 }
  0xab   :  { %v178_v30 = vadd.s32 %v177_v27, %v168_v26  ;;  %v156_v31 = vadd.s32 %v155_v18, %v146_v29  ;;  %v458_v18 = vld [vmem:[#allocation7 + $0x30] sm:$0xff] }
  0xac   :  { %482 = vmatpush.msra.mxu2 %v458_v18 }
  0xad   :  { %v182_v32 = vadd.s32 1, %v178_v30  ;;  %vm181_vm9 = vc.u32 %v156_v31, %v175_v0  ;;  %v180_v45 = vadd.s32 %v175_v0, %v156_v31  ;;  %v457_v31 = vld [vmem:[#allocation7 + $0x28] sm:$0xff]  ;;  %v454_v0 = vld [vmem:[#allocation7 + $0x10] sm:$0xff] }
  0xae   :  { %503 = vmatpush.msra.mxu3 %v457_v31 }
  0xaf   :  { %v183_v34 = vsel %vm181_vm9, %v182_v32, %v178_v30  ;;  %v456_v30 = vld [vmem:[#allocation7 + $0x20] sm:$0xff]  ;;  %v455_v32 = vld [vmem:[#allocation7 + $0x18] sm:$0xff]  ;;  %vm517_vm9 = vmor %vm516_vm8, %vm513_vm7 }
  0xb0   :  { %v184_v35 = vadd.s32 %v183_v34, %v179_v33  ;;  %483 = vmatpush.msra.mxu2 %v456_v30  ;;  %v452_v33 = vld [vmem:[#allocation7] sm:$0xff]  ;;  %v453_v34 = vld [vmem:[#allocation7 + $0x8] sm:$0xff]  ;;  %504 = vmatpush.msra.mxu3 %v455_v32 }
  0xb2   :  { %v185_v36 = vadd.s32 536870912, %v184_v35  ;;  %484 = vmatpush.msra.mxu2 %v454_v0  ;;  %505 = vmatpush.msra.mxu3 %v453_v34 }
  0xb4   :  { %v186_v37 = vshrl.u32 %v185_v36, 30  ;;  %485 = vmatpush.msra.mxu2 %v452_v33 }
  0xb6   :  { %v187_v38 = vshll.u32 %v186_v37, 30  ;;  %v210_v58 = vsub.s32 4, %v186_v37 }
  0xb8   :  { %v188_v39 = vsub.s32 %v184_v35, %v187_v38  ;;  %v211_v63 = vsel %vm88_vm12, %v210_v58, %v186_v37 }
  0xb9   :  { %v213_v3 = vsel %vm87_vm13, 0, %v211_v63 }
  0xba   :  { %vm189_vm10 = vcmp.lt.s32.totalorder %v188_v39, 0  ;;  %v190_v41 = vsub.s32 0, %v188_v39  ;;  %v230_v8 = vadd.s32 3, %v213_v3  ;;  %v387_v14 = vand.u32 3, %v213_v3 }
  0xbc   :  { %v191_v42 = vsel %vm189_vm10, %v190_v41, %v188_v39  ;;  %v231_v15 = vand.u32 3, %v230_v8  ;;  %vm388_vm14 = vcmp.lt.s32.totalorder %v387_v14, 2  ;;  %vm389_vm15 = vcmp.eq.s32.totalorder %v387_v14, 0  ;;  %v460_v41 = vld [vmem:[%s811_s6] sm:$0x3] }
  0xbd   :  { %v192_v43 = vclz %v191_v42  ;;  %vm392_vm0 = vcmp.eq.s32.totalorder %v387_v14, 2  ;;  %v463_v42 = vperm.slane %v460_v41, 1 }
  0xbe   :  { %vm232_vm2 = vcmp.lt.s32.totalorder %v231_v15, 2  ;;  %vm233_vm3 = vcmp.eq.s32.totalorder %v231_v15, 0  ;;  %vm236_vm4 = vcmp.eq.s32.totalorder %v231_v15, 2 }
  0xbf   :  { %v538_v44 = vadd.s32 4294967294, %v192_v43  ;;  %v462_v43 = vperm.slane %v460_v41, 0 }
  0xc1   :  { %vm539_vm11 = vcmp.lt.s32.totalorder %v538_v44, 0 }
  0xc2   :  { %v195_v20 = vsel %vm539_vm11, 0, %v538_v44 }
  0xc3   :  { %v196_v46 = vsub.s32 32, %v195_v20  ;;  %v200_v47 = vsub.s32 4294967266, %v195_v20  ;;  %v197_v48 = vshll.u32 %v188_v39, %v195_v20 }
  0xc5   :  { %v198_v49 = vshrl.u32 %v180_v45, %v196_v46  ;;  %v201_v40 = vadd.s32 127, %v200_v47 }
  0xc7   :  { %v199_v50 = vor.u32 %v198_v49, %v197_v48  ;;  %v202_v51 = vshll.u32 %v201_v40, 23 }
  0xc9   :  { %v203_v52 = vor.u32 4788187, %v202_v51  ;;  %v206_v54 = vcvt.s32.f32 %v199_v50 }
  0xcb   :  { %v204_v53 = vand.u32 2147483647, %v203_v52 }
  0xcd   :  { %v207_v55 = vmul.f32 %v206_v54, %v204_v53 }
  0xcf   :  { %v208_v56 = vxor.u32 2147483648, %v207_v55 }
  0xd1   :  { %v209_v57 = vsel %vm88_vm12, %v208_v56, %v207_v55 }
  0xd2   :  { %v212_v59 = vsel %vm87_vm13, %v738_v9, %v209_v57  ;;  %v564_v9 = vld [vmem:[%s809_s4] ss:$0 sm:$0xff]  ;;  %s681_s4 = smov [#allocation8]  }
  0xd3   :  { %v214_v60 = vmul.f32 %v212_v59, %v212_v59  ;;  %s524_s23 = sshll.u32 %s681_s4, 4  ;;  %s525_s23 = int_to_ptr.vmem [resolvable:$true] %s524_s23 }
  0xd5   :  { %v215_v61 = vmul.f32 -0.001358992, %v214_v60  ;;  %v222_v62 = vmul.f32 -0.00019511016, %v214_v60 }
  0xd7   :  { %v216_v1 = vadd.f32 0.041655596, %v215_v61  ;;  %v223_v2 = vadd.f32 0.008332121, %v222_v62 }
  0xd9   :  { %v217_v4 = vmul.f32 %v216_v1, %v214_v60  ;;  %v224_v5 = vmul.f32 %v223_v2, %v214_v60 }
  0xdb   :  { %v218_v6 = vadd.f32 -0.4999988, %v217_v4  ;;  %v225_v7 = vadd.f32 -0.16666654, %v224_v5 }
  0xdd   :  { %v219_v10 = vmul.f32 %v218_v6, %v214_v60  ;;  %v226_v11 = vmul.f32 %v225_v7, %v214_v60 }
  0xdf   :  { %v220_v12 = vadd.f32 1.0, %v219_v10  ;;  %v227_v13 = vadd.f32 1.0, %v226_v11 }
  0xe1   :  { %v228_v16 = vmul.f32 %v227_v13, %v212_v59  ;;  %v237_v17 = vxor.u32 2147483648, %v220_v12 }
  0xe3   :  { %v234_v19 = vxor.u32 2147483648, %v228_v16  ;;  %v394_v22 = vsel %vm392_vm0, %v237_v17, %v228_v16  ;;  %v238_v24 = vsel %vm236_vm4, %v237_v17, %v228_v16 }
  0xe5   :  { %v391_v21 = vsel %vm389_vm15, %v220_v12, %v234_v19  ;;  %v235_v23 = vsel %vm233_vm3, %v220_v12, %v234_v19 }
  0xe6   :  { %v395_v25 = vsel %vm388_vm14, %v391_v21, %v394_v22  ;;  %v239_v26 = vsel %vm232_vm2, %v235_v23, %v238_v24 }
  0xe7   :  { %v396_v27 = vsel %vm229_vm5, nan, %v395_v25  ;;  %v240_v29 = vsel %vm229_vm5, nan, %v239_v26 }
  0xe8   :  { %543 = vmatmul.msk.f32.vlgmr.msra.gmra.mxu0 %vm399_vm1, %v396_v27  ;;  %544 = vmatmul.msk.f32.vlgmr.msra.gmra.mxu1 %vm399_vm1, %v240_v29 }
 0x165   :  { %v420_v35 = vpop.f32.mrf.mxu0  ;;  %v443_v36 = vpop.f32.mrf.mxu1 }
 0x166   :  { %v444_v37 = vadd.f32 %v443_v36, %v420_v35 }
 0x168   :  { %v450_v38 = vadd.f32 %v564_v9, %v444_v37 }
 0x16a   :  { %v451_v39 = vmax.f32 %v450_v38, 0.0 }
 0x16c   :  { %545 = vmatmul.msk.f32.vlgmr.msra.gmra.mxu2 %vm466_vm6, %v451_v39  ;;  %546 = vmatmul.msk.f32.vlgmr.msra.gmra.mxu3 %vm466_vm6, %v451_v39 }
 0x1ef   :  { %v487_v44 = vpop.f32.mrf.mxu2  ;;  %v507_v20 = vpop.f32.mrf.mxu3 }
 0x1f0   :  { %v508_v45 = vadd.f32 %v507_v20, %v463_v42  ;;  %v488_v46 = vadd.f32 %v487_v44, %v462_v43 }
 0x1f2   :  { %v512_v47 = vrot.slane %v508_v45, 6 }
 0x1f4   :  { %v514_v48 = vsel %vm513_vm7, %v488_v46, %v512_v47 }
 0x1f5   :  { %518 = vst.msk [vmem:[#allocation8] sm:$0xf] %vm517_vm9, %v514_v48 }
 0x1f6   :  { %529 = dma.vmem_to_hbm [thread:$0]  %s525_s23, 64, %s527_s26, [#allocation4]  }
 0x1f7   :  { %665 = dma.done.wait [#allocation4], 64  }
 0x1f8   :  { %666 = vsyncadd [#allocation4], 4294967232 }
 0x1f9   :  { %534 = vsyncpa [#allocation3], 1 }
 0x1fa   :  { %535 = vsyncpa [#allocation6], 1 }
 0x1fb   :  { %536 = vsyncpa [#allocation4], 1 }

</bundles_post_ra>
